<compile_context>
chip_gen: v7x
topology: tpu7x:2x2x1
jax: 0.10.0
libtpu: 0.0.40
codegen_flags: <defaults>
</compile_context>

<pallas_src>
import functools
from typing import NamedTuple

import jax
import jax.numpy as jnp
from jax import lax
from jax.experimental import pallas as pl
from jax.experimental.pallas import tpu as pltpu

_SUB = 8
_LANES = 128
_BATCH_BLOCK = 256  # per-grid-step batch rows once B scales up


class PackedMeta(NamedTuple):
    self_state_dim: int
    rnn_hidden_dim: int
    m1: int
    m2: int
    o_wih: int
    o_whh: int
    o_w1s: int
    o_w1h: int
    o_w2: int
    o_vec: int
    n_rows: int


def _rpad(n):
    return -(-n // _SUB) * _SUB


def pack_value_network1_params(params, self_state_dim, rnn_hidden_dim):
    """One-time parameter packing (call at init, NOT per forward).

    Packs all 10 parameters of the module into a single (R, 128) f32 block so the
    kernel takes 2 operands total and slices statically (free at runtime).
    """
    S, H = self_state_dim, rnn_hidden_dim
    D = params["w_ih"].shape[1]
    M1 = params["w1"].shape[0]
    M2 = params["w2"].shape[0]

    o_wih = 0
    o_whh = o_wih + _rpad(D)
    o_w1s = o_whh + _rpad(H)
    o_w1h = o_w1s + _rpad(S)
    o_w2 = o_w1h + _rpad(H)
    o_vec = o_w2 + _rpad(M1)
    n_rows = o_vec + _SUB

    w1_t = params["w1"].T  # (S+H, M1)
    packed = jnp.zeros((n_rows, _LANES), jnp.float32)
    packed = packed.at[o_wih:o_wih + D, 0:H].set(params["w_ih"].T)          # W_ih^T
    packed = packed.at[o_whh:o_whh + H, 0:H].set(params["w_hh"].T)          # W_hh^T
    packed = packed.at[o_w1s:o_w1s + S, 0:M1].set(w1_t[:S, :])              # W1[:, :S]^T
    packed = packed.at[o_w1h:o_w1h + H, 0:M1].set(w1_t[S:, :])              # W1[:, S:]^T
    packed = packed.at[o_w2:o_w2 + M1, 0:M2].set(params["w2"].T)            # W2^T
    packed = packed.at[o_vec + 0, 0:H].set(params["b_ih"] + params["b_hh"])  # combined RNN bias
    packed = packed.at[o_vec + 1, 0:M1].set(params["b1"])
    packed = packed.at[o_vec + 2, 0:M2].set(params["b2"])
    packed = packed.at[o_vec + 3, 0:M2].set(params["w3"][0])                # W3 row
    packed = packed.at[o_vec + 4, 0].set(params["b3"][0])

    meta = PackedMeta(S, H, M1, M2, o_wih, o_whh, o_w1s, o_w1h, o_w2, o_vec, n_rows)
    return packed, meta


def _value_net_kernel(T, Bb, D, S, H, M1, M2, offs,
                      state_ref,    # (T, Bb, D) f32, time-major batch block
                      packed_ref,   # (R, 128)   f32 packed parameters
                      out_ref):     # (1, Bb)    f32 (lane-dense: batch along lanes)
    o_wih, o_whh, o_w1s, o_w1h, o_w2, o_vec = offs

    # Static slices into the packed parameter block (free at runtime).
    wih = packed_ref[o_wih:o_wih + D, 0:H]              # (D, H)   = W_ih^T
    whh = packed_ref[o_whh:o_whh + H, 0:H]              # (H, H)   = W_hh^T
    w1s = packed_ref[o_w1s:o_w1s + S, 0:M1]             # (S, M1)
    w1h = packed_ref[o_w1h:o_w1h + H, 0:M1]             # (H, M1)
    w2 = packed_ref[o_w2:o_w2 + M1, 0:M2]               # (M1, M2)
    b_rnn = packed_ref[o_vec + 0:o_vec + 1, 0:H]        # (1, H)  = b_ih + b_hh
    b1 = packed_ref[o_vec + 1:o_vec + 2, 0:M1]          # (1, M1)
    b2 = packed_ref[o_vec + 2:o_vec + 3, 0:M2]          # (1, M2)
    w3 = packed_ref[o_vec + 3:o_vec + 4, 0:M2]          # (1, M2)
    b3 = packed_ref[o_vec + 4:o_vec + 5, 0:1]           # (1, 1)

    # Per-timestep input rows (static leading-dim loads).
    xs = [state_ref[t] for t in range(T)]                # each (Bb, D)

    # Input projection hoisted off the serial chain; combined RNN bias folded in.
    xp = [jnp.dot(x_t, wih, preferred_element_type=jnp.float32) + b_rnn for x_t in xs]

    # Serial tanh recurrence, fully unrolled (T static); h lives in vregs only.
    # TODO(synk): stage whh once (matmul_push_rhs) instead of re-feeding it per step.
    h = jnp.zeros((Bb, H), jnp.float32)
    for t in range(T):
        h = jnp.tanh(xp[t] + jnp.dot(h, whh, preferred_element_type=jnp.float32))

    # self_state = state[:, 0, :S]
    self_state = xs[0][:, 0:S]                           # (Bb, S)

    # MLP: Linear -> ReLU -> Linear -> ReLU -> Linear (concat fused via split W1).
    y1 = jnp.maximum(
        jnp.dot(self_state, w1s, preferred_element_type=jnp.float32)
        + jnp.dot(h, w1h, preferred_element_type=jnp.float32) + b1, 0.0)
    y2 = jnp.maximum(jnp.dot(y1, w2, preferred_element_type=jnp.float32) + b2, 0.0)

    # Final layer emitted lane-dense: (1, M2) . (Bb, M2)^T -> (1, Bb).
    val = lax.dot_general(w3, y2, (((1,), (1,)), ((), ())),
                          preferred_element_type=jnp.float32) + b3
    out_ref[...] = val.astype(out_ref.dtype)


@functools.partial(jax.jit, static_argnames=("meta",))
def value_network1_forward(state, packed, meta):
    """state: (B, T, input_dim) batch-first, float32. Returns (B, 1)."""
    B, T, D = state.shape
    S, H, M1, M2 = meta.self_state_dim, meta.rnn_hidden_dim, meta.m1, meta.m2

    # Gated batch blocking: grid-less at toy sizes, 256-row parallel blocks at scale.
    if B <= _BATCH_BLOCK:
        Bb = _rpad(B)
        Bp = Bb
    else:
        Bb = _BATCH_BLOCK
        Bp = -(-B // Bb) * Bb
    grid = (Bp // Bb,)

    # Time-major + batch-padded: (T, Bp, D). Padded rows compute garbage h that is
    # dropped by the [:B] slice below — do not reduce over the kernel output first.
    state_tm = jnp.transpose(state.astype(jnp.float32), (1, 0, 2))
    state_tm = jnp.pad(state_tm, ((0, 0), (0, Bp - B), (0, 0)))

    offs = (meta.o_wih, meta.o_whh, meta.o_w1s, meta.o_w1h, meta.o_w2, meta.o_vec)
    kernel = functools.partial(_value_net_kernel, T, Bb, D, S, H, M1, M2, offs)

    out = pl.pallas_call(
        kernel,
        out_shape=jax.ShapeDtypeStruct((1, Bp), jnp.float32),
        grid_spec=pltpu.PrefetchScalarGridSpec(
            num_scalar_prefetch=0,
            grid=grid,
            in_specs=[
                pl.BlockSpec((T, Bb, D), lambda i: (0, i, 0)),
                pl.BlockSpec((meta.n_rows, _LANES), lambda i: (0, 0)),
            ],
            out_specs=pl.BlockSpec((1, Bb), lambda i: (0, i)),
        ),
        compiler_params=pltpu.CompilerParams(
            dimension_semantics=("parallel",)),
    )(state_tm, packed)

    return out[0, :B].reshape(B, 1)


def _reference_forward(state, params, self_state_dim, rnn_hidden_dim):
    """Pure-JAX reference mirroring the PyTorch module (full-length sequences)."""
    B, T, D = state.shape
    H = rnn_hidden_dim
    h = jnp.zeros((B, H), jnp.float32)
    for t in range(T):
        x_t = state[:, t, :]
        h = jnp.tanh(x_t @ params["w_ih"].T + params["b_ih"]
                     + h @ params["w_hh"].T + params["b_hh"])
    self_state = state[:, 0, :self_state_dim]
    joint = jnp.concatenate([self_state, h], axis=1)
    y = jnp.maximum(joint @ params["w1"].T + params["b1"], 0.0)
    y = jnp.maximum(y @ params["w2"].T + params["b2"], 0.0)
    return y @ params["w3"].T + params["b3"]


if __name__ == "__main__":
    # Small shapes consistent with crowd_nav:
    #   input_dim=13, self_state_dim=6, rnn_hidden_dim=32, mlp_dims=[64, 32, 1]
    B, T = 2, 8
    input_dim = 13
    self_state_dim = 6
    rnn_hidden_dim = 32
    mlp_dims = [64, 32, 1]
    joint_dim = self_state_dim + rnn_hidden_dim

    key = jax.random.PRNGKey(0)
    keys = jax.random.split(key, 12)

    params = {
        # nn.RNN(input_dim, rnn_hidden_dim) parameters (layer 0)
        "w_ih": 0.1 * jax.random.normal(keys[0], (rnn_hidden_dim, input_dim), jnp.float32),
        "w_hh": 0.1 * jax.random.normal(keys[1], (rnn_hidden_dim, rnn_hidden_dim), jnp.float32),
        "b_ih": 0.1 * jax.random.normal(keys[2], (rnn_hidden_dim,), jnp.float32),
        "b_hh": 0.1 * jax.random.normal(keys[3], (rnn_hidden_dim,), jnp.float32),
        # mlp(joint_dim, [64, 32, 1])
        "w1": 0.1 * jax.random.normal(keys[4], (mlp_dims[0], joint_dim), jnp.float32),
        "b1": 0.1 * jax.random.normal(keys[5], (mlp_dims[0],), jnp.float32),
        "w2": 0.1 * jax.random.normal(keys[6], (mlp_dims[1], mlp_dims[0]), jnp.float32),
        "b2": 0.1 * jax.random.normal(keys[7], (mlp_dims[1],), jnp.float32),
        "w3": 0.1 * jax.random.normal(keys[8], (mlp_dims[2], mlp_dims[1]), jnp.float32),
        "b3": 0.1 * jax.random.normal(keys[9], (mlp_dims[2],), jnp.float32),
    }

    state = jax.random.normal(keys[10], (B, T, input_dim), jnp.float32)

    # One-time packing (init-time), then the cheap per-call jitted forward.
    packed, meta = pack_value_network1_params(params, self_state_dim, rnn_hidden_dim)
    packed = jax.block_until_ready(packed)

    value = value_network1_forward(state, packed, meta)
    value = jax.block_until_ready(value)

    ref = _reference_forward(state, params, self_state_dim, rnn_hidden_dim)
    assert value.shape == (B, 1)
    assert jnp.allclose(value, ref, atol=1e-4, rtol=1e-4), (value, ref)

    print("KERNEL_OK")
</pallas_src>

<mosaic_0001>
module attributes {stable_mosaic.version = 11 : i64} {
  func.func @_value_net_kernel(%arg0: i32, %arg1: memref<8x8x13xf32, #tpu.memory_space<vmem>>, %arg2: memref<160x128xf32, #tpu.memory_space<vmem>>, %arg3: memref<1x8xf32, #tpu.memory_space<vmem>>) attributes {dimension_semantics = [#tpu.dimension_semantics<parallel>], iteration_bounds = array<i64: 1>, scalar_prefetch = 0 : i64, scratch_operands = 0 : i64, tpu.core_type = #tpu.core_type<tc>, window_params = [{transform_indices = @transform_0, window_bounds = array<i64: 8, 8, 13>}, {pipeline_mode = #tpu.pipeline_mode<synchronous>, transform_indices = @transform_1, window_bounds = array<i64: 160, 128>}, {transform_indices = @transform_2, window_bounds = array<i64: 1, 8>}]} {
    %c0 = arith.constant 0 : index
    %c0_0 = arith.constant 0 : index
    %0 = vector.load %arg2[%c0, %c0_0] : memref<160x128xf32, #tpu.memory_space<vmem>>, vector<13x32xf32>
    %c16 = arith.constant 16 : index
    %c0_1 = arith.constant 0 : index
    %1 = vector.load %arg2[%c16, %c0_1] : memref<160x128xf32, #tpu.memory_space<vmem>>, vector<32x32xf32>
    %c48 = arith.constant 48 : index
    %c0_2 = arith.constant 0 : index
    %2 = vector.load %arg2[%c48, %c0_2] : memref<160x128xf32, #tpu.memory_space<vmem>>, vector<6x64xf32>
    %c56 = arith.constant 56 : index
    %c0_3 = arith.constant 0 : index
    %3 = vector.load %arg2[%c56, %c0_3] : memref<160x128xf32, #tpu.memory_space<vmem>>, vector<32x64xf32>
    %c88 = arith.constant 88 : index
    %c0_4 = arith.constant 0 : index
    %4 = vector.load %arg2[%c88, %c0_4] : memref<160x128xf32, #tpu.memory_space<vmem>>, vector<64x32xf32>
    %c152 = arith.constant 152 : index
    %c0_5 = arith.constant 0 : index
    %5 = vector.load %arg2[%c152, %c0_5] : memref<160x128xf32, #tpu.memory_space<vmem>>, vector<1x32xf32>
    %c153 = arith.constant 153 : index
    %c0_6 = arith.constant 0 : index
    %6 = vector.load %arg2[%c153, %c0_6] : memref<160x128xf32, #tpu.memory_space<vmem>>, vector<1x64xf32>
    %c154 = arith.constant 154 : index
    %c0_7 = arith.constant 0 : index
    %7 = vector.load %arg2[%c154, %c0_7] : memref<160x128xf32, #tpu.memory_space<vmem>>, vector<1x32xf32>
    %c155 = arith.constant 155 : index
    %c0_8 = arith.constant 0 : index
    %8 = vector.load %arg2[%c155, %c0_8] : memref<160x128xf32, #tpu.memory_space<vmem>>, vector<1x32xf32>
    %c156 = arith.constant 156 : index
    %c0_9 = arith.constant 0 : index
    %9 = vector.load %arg2[%c156, %c0_9] : memref<160x128xf32, #tpu.memory_space<vmem>>, vector<1x1xf32>
    %c0_10 = arith.constant 0 : index
    %c0_11 = arith.constant 0 : index
    %c0_12 = arith.constant 0 : index
    %10 = vector.load %arg1[%c0_10, %c0_11, %c0_12] : memref<8x8x13xf32, #tpu.memory_space<vmem>>, vector<1x8x13xf32>
    %11 = vector.shape_cast %10 : vector<1x8x13xf32> to vector<8x13xf32>
    %c1 = arith.constant 1 : index
    %c0_13 = arith.constant 0 : index
    %c0_14 = arith.constant 0 : index
    %12 = vector.load %arg1[%c1, %c0_13, %c0_14] : memref<8x8x13xf32, #tpu.memory_space<vmem>>, vector<1x8x13xf32>
    %13 = vector.shape_cast %12 : vector<1x8x13xf32> to vector<8x13xf32>
    %c2 = arith.constant 2 : index
    %c0_15 = arith.constant 0 : index
    %c0_16 = arith.constant 0 : index
    %14 = vector.load %arg1[%c2, %c0_15, %c0_16] : memref<8x8x13xf32, #tpu.memory_space<vmem>>, vector<1x8x13xf32>
    %15 = vector.shape_cast %14 : vector<1x8x13xf32> to vector<8x13xf32>
    %c3 = arith.constant 3 : index
    %c0_17 = arith.constant 0 : index
    %c0_18 = arith.constant 0 : index
    %16 = vector.load %arg1[%c3, %c0_17, %c0_18] : memref<8x8x13xf32, #tpu.memory_space<vmem>>, vector<1x8x13xf32>
    %17 = vector.shape_cast %16 : vector<1x8x13xf32> to vector<8x13xf32>
    %c4 = arith.constant 4 : index
    %c0_19 = arith.constant 0 : index
    %c0_20 = arith.constant 0 : index
    %18 = vector.load %arg1[%c4, %c0_19, %c0_20] : memref<8x8x13xf32, #tpu.memory_space<vmem>>, vector<1x8x13xf32>
    %19 = vector.shape_cast %18 : vector<1x8x13xf32> to vector<8x13xf32>
    %c5 = arith.constant 5 : index
    %c0_21 = arith.constant 0 : index
    %c0_22 = arith.constant 0 : index
    %20 = vector.load %arg1[%c5, %c0_21, %c0_22] : memref<8x8x13xf32, #tpu.memory_space<vmem>>, vector<1x8x13xf32>
    %21 = vector.shape_cast %20 : vector<1x8x13xf32> to vector<8x13xf32>
    %c6 = arith.constant 6 : index
    %c0_23 = arith.constant 0 : index
    %c0_24 = arith.constant 0 : index
    %22 = vector.load %arg1[%c6, %c0_23, %c0_24] : memref<8x8x13xf32, #tpu.memory_space<vmem>>, vector<1x8x13xf32>
    %23 = vector.shape_cast %22 : vector<1x8x13xf32> to vector<8x13xf32>
    %c7 = arith.constant 7 : index
    %c0_25 = arith.constant 0 : index
    %c0_26 = arith.constant 0 : index
    %24 = vector.load %arg1[%c7, %c0_25, %c0_26] : memref<8x8x13xf32, #tpu.memory_space<vmem>>, vector<1x8x13xf32>
    %25 = vector.shape_cast %24 : vector<1x8x13xf32> to vector<8x13xf32>
    %cst = arith.constant dense<0.000000e+00> : vector<8x32xf32>
    %26 = tpu.matmul %11, %0, %cst {dimension_numbers = #tpu.dot_dimension_numbers<[1], [0], [0], [1], [0, 0, 1, 1], [], []>} : vector<8x13xf32>, vector<13x32xf32>, vector<8x32xf32> -> vector<8x32xf32>
    %27 = vector.broadcast %5 : vector<1x32xf32> to vector<8x32xf32>
    %28 = arith.addf %26, %27 : vector<8x32xf32>
    %cst_27 = arith.constant dense<0.000000e+00> : vector<8x32xf32>
    %29 = tpu.matmul %13, %0, %cst_27 {dimension_numbers = #tpu.dot_dimension_numbers<[1], [0], [0], [1], [0, 0, 1, 1], [], []>} : vector<8x13xf32>, vector<13x32xf32>, vector<8x32xf32> -> vector<8x32xf32>
    %30 = vector.broadcast %5 : vector<1x32xf32> to vector<8x32xf32>
    %31 = arith.addf %29, %30 : vector<8x32xf32>
    %cst_28 = arith.constant dense<0.000000e+00> : vector<8x32xf32>
    %32 = tpu.matmul %15, %0, %cst_28 {dimension_numbers = #tpu.dot_dimension_numbers<[1], [0], [0], [1], [0, 0, 1, 1], [], []>} : vector<8x13xf32>, vector<13x32xf32>, vector<8x32xf32> -> vector<8x32xf32>
    %33 = vector.broadcast %5 : vector<1x32xf32> to vector<8x32xf32>
    %34 = arith.addf %32, %33 : vector<8x32xf32>
    %cst_29 = arith.constant dense<0.000000e+00> : vector<8x32xf32>
    %35 = tpu.matmul %17, %0, %cst_29 {dimension_numbers = #tpu.dot_dimension_numbers<[1], [0], [0], [1], [0, 0, 1, 1], [], []>} : vector<8x13xf32>, vector<13x32xf32>, vector<8x32xf32> -> vector<8x32xf32>
    %36 = vector.broadcast %5 : vector<1x32xf32> to vector<8x32xf32>
    %37 = arith.addf %35, %36 : vector<8x32xf32>
    %cst_30 = arith.constant dense<0.000000e+00> : vector<8x32xf32>
    %38 = tpu.matmul %19, %0, %cst_30 {dimension_numbers = #tpu.dot_dimension_numbers<[1], [0], [0], [1], [0, 0, 1, 1], [], []>} : vector<8x13xf32>, vector<13x32xf32>, vector<8x32xf32> -> vector<8x32xf32>
    %39 = vector.broadcast %5 : vector<1x32xf32> to vector<8x32xf32>
    %40 = arith.addf %38, %39 : vector<8x32xf32>
    %cst_31 = arith.constant dense<0.000000e+00> : vector<8x32xf32>
    %41 = tpu.matmul %21, %0, %cst_31 {dimension_numbers = #tpu.dot_dimension_numbers<[1], [0], [0], [1], [0, 0, 1, 1], [], []>} : vector<8x13xf32>, vector<13x32xf32>, vector<8x32xf32> -> vector<8x32xf32>
    %42 = vector.broadcast %5 : vector<1x32xf32> to vector<8x32xf32>
    %43 = arith.addf %41, %42 : vector<8x32xf32>
    %cst_32 = arith.constant dense<0.000000e+00> : vector<8x32xf32>
    %44 = tpu.matmul %23, %0, %cst_32 {dimension_numbers = #tpu.dot_dimension_numbers<[1], [0], [0], [1], [0, 0, 1, 1], [], []>} : vector<8x13xf32>, vector<13x32xf32>, vector<8x32xf32> -> vector<8x32xf32>
    %45 = vector.broadcast %5 : vector<1x32xf32> to vector<8x32xf32>
    %46 = arith.addf %44, %45 : vector<8x32xf32>
    %cst_33 = arith.constant dense<0.000000e+00> : vector<8x32xf32>
    %47 = tpu.matmul %25, %0, %cst_33 {dimension_numbers = #tpu.dot_dimension_numbers<[1], [0], [0], [1], [0, 0, 1, 1], [], []>} : vector<8x13xf32>, vector<13x32xf32>, vector<8x32xf32> -> vector<8x32xf32>
    %48 = vector.broadcast %5 : vector<1x32xf32> to vector<8x32xf32>
    %49 = arith.addf %47, %48 : vector<8x32xf32>
    %cst_34 = arith.constant 0.000000e+00 : f32
    %50 = vector.broadcast %cst_34 : f32 to vector<8x32xf32>
    %cst_35 = arith.constant dense<0.000000e+00> : vector<8x32xf32>
    %51 = tpu.matmul %50, %1, %cst_35 {dimension_numbers = #tpu.dot_dimension_numbers<[1], [0], [0], [1], [0, 0, 1, 1], [], []>} : vector<8x32xf32>, vector<32x32xf32>, vector<8x32xf32> -> vector<8x32xf32>
    %52 = arith.addf %28, %51 : vector<8x32xf32>
    %53 = math.tanh %52 : vector<8x32xf32>
    %cst_36 = arith.constant dense<0.000000e+00> : vector<8x32xf32>
    %54 = tpu.matmul %53, %1, %cst_36 {dimension_numbers = #tpu.dot_dimension_numbers<[1], [0], [0], [1], [0, 0, 1, 1], [], []>} : vector<8x32xf32>, vector<32x32xf32>, vector<8x32xf32> -> vector<8x32xf32>
    %55 = arith.addf %31, %54 : vector<8x32xf32>
    %56 = math.tanh %55 : vector<8x32xf32>
    %cst_37 = arith.constant dense<0.000000e+00> : vector<8x32xf32>
    %57 = tpu.matmul %56, %1, %cst_37 {dimension_numbers = #tpu.dot_dimension_numbers<[1], [0], [0], [1], [0, 0, 1, 1], [], []>} : vector<8x32xf32>, vector<32x32xf32>, vector<8x32xf32> -> vector<8x32xf32>
    %58 = arith.addf %34, %57 : vector<8x32xf32>
    %59 = math.tanh %58 : vector<8x32xf32>
    %cst_38 = arith.constant dense<0.000000e+00> : vector<8x32xf32>
    %60 = tpu.matmul %59, %1, %cst_38 {dimension_numbers = #tpu.dot_dimension_numbers<[1], [0], [0], [1], [0, 0, 1, 1], [], []>} : vector<8x32xf32>, vector<32x32xf32>, vector<8x32xf32> -> vector<8x32xf32>
    %61 = arith.addf %37, %60 : vector<8x32xf32>
    %62 = math.tanh %61 : vector<8x32xf32>
    %cst_39 = arith.constant dense<0.000000e+00> : vector<8x32xf32>
    %63 = tpu.matmul %62, %1, %cst_39 {dimension_numbers = #tpu.dot_dimension_numbers<[1], [0], [0], [1], [0, 0, 1, 1], [], []>} : vector<8x32xf32>, vector<32x32xf32>, vector<8x32xf32> -> vector<8x32xf32>
    %64 = arith.addf %40, %63 : vector<8x32xf32>
    %65 = math.tanh %64 : vector<8x32xf32>
    %cst_40 = arith.constant dense<0.000000e+00> : vector<8x32xf32>
    %66 = tpu.matmul %65, %1, %cst_40 {dimension_numbers = #tpu.dot_dimension_numbers<[1], [0], [0], [1], [0, 0, 1, 1], [], []>} : vector<8x32xf32>, vector<32x32xf32>, vector<8x32xf32> -> vector<8x32xf32>
    %67 = arith.addf %43, %66 : vector<8x32xf32>
    %68 = math.tanh %67 : vector<8x32xf32>
    %cst_41 = arith.constant dense<0.000000e+00> : vector<8x32xf32>
    %69 = tpu.matmul %68, %1, %cst_41 {dimension_numbers = #tpu.dot_dimension_numbers<[1], [0], [0], [1], [0, 0, 1, 1], [], []>} : vector<8x32xf32>, vector<32x32xf32>, vector<8x32xf32> -> vector<8x32xf32>
    %70 = arith.addf %46, %69 : vector<8x32xf32>
    %71 = math.tanh %70 : vector<8x32xf32>
    %cst_42 = arith.constant dense<0.000000e+00> : vector<8x32xf32>
    %72 = tpu.matmul %71, %1, %cst_42 {dimension_numbers = #tpu.dot_dimension_numbers<[1], [0], [0], [1], [0, 0, 1, 1], [], []>} : vector<8x32xf32>, vector<32x32xf32>, vector<8x32xf32> -> vector<8x32xf32>
    %73 = arith.addf %49, %72 : vector<8x32xf32>
    %74 = math.tanh %73 : vector<8x32xf32>
    %75 = vector.extract_strided_slice %11 {offsets = [0, 0], sizes = [8, 6], strides = [1, 1]} : vector<8x13xf32> to vector<8x6xf32>
    %cst_43 = arith.constant dense<0.000000e+00> : vector<8x64xf32>
    %76 = tpu.matmul %75, %2, %cst_43 {dimension_numbers = #tpu.dot_dimension_numbers<[1], [0], [0], [1], [0, 0, 1, 1], [], []>} : vector<8x6xf32>, vector<6x64xf32>, vector<8x64xf32> -> vector<8x64xf32>
    %cst_44 = arith.constant dense<0.000000e+00> : vector<8x64xf32>
    %77 = tpu.matmul %74, %3, %cst_44 {dimension_numbers = #tpu.dot_dimension_numbers<[1], [0], [0], [1], [0, 0, 1, 1], [], []>} : vector<8x32xf32>, vector<32x64xf32>, vector<8x64xf32> -> vector<8x64xf32>
    %78 = arith.addf %76, %77 : vector<8x64xf32>
    %79 = vector.broadcast %6 : vector<1x64xf32> to vector<8x64xf32>
    %80 = arith.addf %78, %79 : vector<8x64xf32>
    %cst_45 = arith.constant 0.000000e+00 : f32
    %81 = vector.broadcast %cst_45 : f32 to vector<8x64xf32>
    %82 = arith.maximumf %80, %81 : vector<8x64xf32>
    %cst_46 = arith.constant dense<0.000000e+00> : vector<8x32xf32>
    %83 = tpu.matmul %82, %4, %cst_46 {dimension_numbers = #tpu.dot_dimension_numbers<[1], [0], [0], [1], [0, 0, 1, 1], [], []>} : vector<8x64xf32>, vector<64x32xf32>, vector<8x32xf32> -> vector<8x32xf32>
    %84 = vector.broadcast %7 : vector<1x32xf32> to vector<8x32xf32>
    %85 = arith.addf %83, %84 : vector<8x32xf32>
    %cst_47 = arith.constant 0.000000e+00 : f32
    %86 = vector.broadcast %cst_47 : f32 to vector<8x32xf32>
    %87 = arith.maximumf %85, %86 : vector<8x32xf32>
    %cst_48 = arith.constant dense<0.000000e+00> : vector<1x8xf32>
    %88 = tpu.matmul %8, %87, %cst_48 {dimension_numbers = #tpu.dot_dimension_numbers<[1], [1], [0], [0], [0, 0, 1, 0], [], []>} : vector<1x32xf32>, vector<8x32xf32>, vector<1x8xf32> -> vector<1x8xf32>
    %89 = vector.broadcast %9 : vector<1x1xf32> to vector<1x8xf32>
    %90 = arith.addf %88, %89 : vector<1x8xf32>
    %c0_49 = arith.constant 0 : index
    %c0_50 = arith.constant 0 : index
    %91 = vector.load %arg3[%c0_49, %c0_50] : memref<1x8xf32, #tpu.memory_space<vmem>>, vector<1x8xf32>
    tpu.vector_store %arg3[%c0_49, %c0_50], %90 {strides = array<i32>} : memref<1x8xf32, #tpu.memory_space<vmem>>, vector<1x8xf32>,
    return
  }
  func.func @transform_0(%arg0: i32) -> (i32, i32, i32) {
    %c0_i32 = arith.constant 0 : i32
    %c0_i32_0 = arith.constant 0 : i32
    %c0_i32_1 = arith.constant 0 : i32
    return %c0_i32, %arg0, %c0_i32_0 : i32, i32, i32
  }
  func.func @transform_1(%arg0: i32) -> (i32, i32) {
    %c0_i32 = arith.constant 0 : i32
    %c0_i32_0 = arith.constant 0 : i32
    %c0_i32_1 = arith.constant 0 : i32
    return %c0_i32, %c0_i32_0 : i32, i32
  }
  func.func @transform_2(%arg0: i32) -> (i32, i32) {
    %c0_i32 = arith.constant 0 : i32
    %c0_i32_0 = arith.constant 0 : i32
    return %c0_i32, %arg0 : i32, i32
  }
}

</mosaic_0001>

<bundles_post_ra>
// kernel: value_network1_forward.1
= control target key start
LH: loop header
LB: loop body
LE: loop exit
PB: predicated region body
PF: predicated region fallthrough
CT: control target
= control target key end

     0   :  { %7 = vsyncpa [#allocation3], 0  ;;  %s2056_s9 = smov [#allocation2]   ;;  %s2263_s0 = inlined_call_operand.vmem [shape: f32[8,8,13], index: 0, kind: input, shape index: {}]   ;;  %s2264_s1 = inlined_call_operand.hbm [shape: f32[160,128], index: 1, kind: input, shape index: {}]   ;;  %s2265_s2 = inlined_call_operand.vmem [shape: f32[1,8], index: 2, kind: output, shape index: {}]  }
   0x1   :  { %s15_s10 = sshll.u32 %s2056_s9, 4  ;;  %s2032_s13 = scalar_lea.hbm %s2264_s1, 2560  ;;  %s16_s10 = int_to_ptr.vmem [resolvable:$true] %s15_s10 }
   0x2   :  { %p2033_p0 = scmp.ne.s32.totalorder %s2264_s1, %s2032_s13  ;;  %p2036_p1 = scmp.lt.u32.totalorder %s2032_s13, %s2264_s1 }
   0x4   :  { %p2038_p2 = pnand %p2036_p1, %p2033_p0 }
   0x6   :  { %2041 = shalt.err (!%p2038_p2)
}
   0x7   :  { %s2042_s18 = scalar_lea.vmem %s16_s10, 2560  ;;  %p2047_p4 = scmp.lt.s32.totalorder %s16_s10, %s16_s10 }
   0x8   :  { %p2043_p3 = scmp.ne.s32.totalorder %s16_s10, %s2042_s18  ;;  %p2048_p5 = scmp.lt.s32.totalorder %s2042_s18, %s2042_s18 }
   0xa   :  { %p2049_p6 = por %p2048_p5, %p2047_p4 }
   0xc   :  { %p2050_p7 = pnand %p2049_p6, %p2043_p3 }
   0xe   :  { %2053 = shalt.err (!%p2050_p7)
}
   0xf   :  { %s2057_s19 = smov 128   ;;  %s2058_s20 = smov 8  }
  0x10   :  { %21 = dma.hbm_to_vmem [thread:$0]  %s2264_s1, 2560, %s16_s10, [#allocation3], %s2057_s19, %s2057_s19, %s2058_s20  }
  0x11   :  { %2054 = dma.done.wait [#allocation3], 2560  }
  0x12   :  { %2055 = vsyncadd [#allocation3], 4294964736  ;;  %v2059_v0 = vmov 0.0|0.0   ;;  %vm2060_vm0 = vmmov 0   ;;  %v2061_v1 = vmov 0.0   ;;  %vm72_vm1 = vcmask 1044480  }
  0x13   :  { %1886 = vmatprep.subr.bf16.mxu0 %v2059_v0  ;;  %1898 = vmatprep.subr.bf16.mxu1 %v2059_v0  ;;  %v25_v2 = vld [vmem:[#allocation2] sm:$0xff]  ;;  %v26_v3 = vld [vmem:[#allocation2 + $0x8] sm:$0x1f]  ;;  %vm2062_vm2 = vmmov 1   ;;  %vm68_vm4 = vcmask 105472   ;;  %v1582_v8 = vld [vmem:[%s2263_s0 + $0x10] sm:$0xff] }
  0x14   :  { %1706 = vmatprep.mubr.msk.f32.mxu0 %vm2060_vm0, %v2061_v1  ;;  %1727 = vmatprep.mubr.msk.f32.mxu1 %vm2060_vm0, %v2061_v1  ;;  %vm2097_vm3 = vmpackc.low %vm72_vm1, %vm2062_vm2  ;;  %v1887_v5 = vpack.c.bf16 %v26_v3, %v25_v2  ;;  %v2106_v6 = vld [vmem:[%s2263_s0] sm:$0xff]  ;;  %v1581_v7 = vld [vmem:[%s2263_s0 + $0x8] sm:$0xff]  ;;  %vm657_vm5 = vcmask 261120   ;;  %vm1334_vm6 = vcmask 1045504   ;;  %vm1331_vm7 = vcmask 48128  }
  0x15   :  { %v1584_v9 = vld [vmem:[%s2263_s0 + $0x20] sm:$0xff]  ;;  %v27_v10 = vld [vmem:[#allocation2 + $0x10] sm:$0xff]  ;;  %v28_v11 = vld [vmem:[#allocation2 + $0x18] sm:$0xff]  ;;  %vm1418_vm8 = vcmask 523264   ;;  %vm1574_vm9 = vcmask 57344  }
  0x16   :  { %1889 = vmatpush3.bf16.msk.msra.mxu0 %vm2097_vm3, %v1887_v5  ;;  %1901 = vmatpush3.bf16.msk.msra.mxu1 %vm2097_vm3, %v1887_v5  ;;  %v1586_v12 = vld [vmem:[%s2263_s0 + $0x30] sm:$0xff]  ;;  %v2148_v13 = vpack.c.bf16 %v28_v11, %v27_v10  ;;  %v29_v14 = vld [vmem:[#allocation2 + $0x20] sm:$0xff]  ;;  %v30_v15 = vld [vmem:[#allocation2 + $0x28] sm:$0xff] }
  0x17   :  { %1890 = vmatprep.subr.bf16.mxu0 %v2059_v0  ;;  %1906 = vmatprep.subr.bf16.mxu1 %v2059_v0  ;;  %v2153_v16 = vpack.c.bf16 %v30_v15, %v29_v14  ;;  %v1583_v17 = vld [vmem:[%s2263_s0 + $0x18] sm:$0xff]  ;;  %v1585_v18 = vld [vmem:[%s2263_s0 + $0x28] sm:$0xff]  ;;  %v33_v53 = vld [vmem:[#allocation2 + $0x40] sm:$0xff] }
  0x18   :  { %v1587_v19 = vld [vmem:[%s2263_s0 + $0x38] sm:$0xff]  ;;  %v34_v54 = vld [vmem:[#allocation2 + $0x48] sm:$0xff]  ;;  %v35_v56 = vld [vmem:[#allocation2 + $0x50] sm:$0xff] }
  0x19   :  { %1707 = vmatmul.mubr.msk.f32.vlgmr.msra.gmra.mrb[0].mxu0 %vm68_vm4, %v2106_v6  ;;  %1728 = vmatmul.mubr.msk.f32.vlgmr.msra.gmra.mrb[0].mxu1 %vm68_vm4, %v1583_v17  ;;  %v2195_v22 = vld [vmem:[#allocation2 + $0x98] ss:$0 sm:$0xff]  ;;  %v31_v57 = vld [vmem:[#allocation2 + $0x30] sm:$0x3f]  ;;  %v1970_v58 = vpack.c.bf16 %v35_v56, %v34_v54  ;;  %v37_v60 = vld [vmem:[#allocation2 + $0x60] sm:$0xff] }
  0x1a   :  { %1893 = vmatpush3.bf16.msk.msra.mxu0 %vm2097_vm3, %v1887_v5  ;;  %1713 = vmatprep.mubr.msk.f32.mxu0 %vm2060_vm0, %v2061_v1  ;;  %v32_v52 = vld [vmem:[#allocation2 + $0x38] sm:$0xff]  ;;  %v38_v61 = vld [vmem:[#allocation2 + $0x68] sm:$0xff]  ;;  %v39_v63 = vld [vmem:[#allocation2 + $0x70] sm:$0xff] }
  0x1b   :  { %1894 = vmatprep.subr.bf16.mxu0 %v2059_v0  ;;  %1909 = vmatpush3.bf16.msk.msra.mxu1 %vm2097_vm3, %v1887_v5  ;;  %v1967_v55 = vpack.c.bf16 %v33_v53, %v32_v52  ;;  %v36_v59 = vld [vmem:[#allocation2 + $0x58] sm:$0xff]  ;;  %v1976_v2 = vpack.c.bf16 %v39_v63, %v38_v61  ;;  %v41_v10 = vld [vmem:[#allocation2 + $0x80] sm:$0xff] }
  0x1c   :  { %1741 = vmatprep.mubr.msk.f32.mxu1 %vm2060_vm0, %v2061_v1  ;;  %1914 = vmatprep.subr.bf16.mxu1 %v2059_v0  ;;  %v1973_v62 = vpack.c.bf16 %v37_v60, %v36_v59  ;;  %v1615_v15 = vld [vmem:[#allocation2 + $0x99] ss:$0 sm:$0xff] }
  0x1d   :  { %1714 = vmatmul.mubr.msk.f32.vlgmr.msra.gmra.mrb[2].mxu0 %vm68_vm4, %v1581_v7 }
  0x1e   :  { %1897 = vmatpush3.bf16.msk.msra.mxu0 %vm2097_vm3, %v1887_v5  ;;  %1720 = vmatprep.mubr.msk.f32.mxu0 %vm2060_vm0, %v2061_v1 }
  0x1f   :  { %1902 = vmatprep.subr.bf16.mxu0 %v2059_v0  ;;  %1742 = vmatmul.mubr.msk.f32.vlgmr.msra.gmra.mrb[2].mxu1 %vm68_vm4, %v1585_v18 }
  0x20   :  { %1917 = vmatpush3.bf16.msk.msra.mxu1 %vm2097_vm3, %v1887_v5  ;;  %1755 = vmatprep.mubr.msk.f32.mxu1 %vm2060_vm0, %v2061_v1 }
  0x21   :  { %1721 = vmatmul.mubr.msk.f32.vlgmr.msra.gmra.mrb[4].mxu0 %vm68_vm4, %v1582_v8  ;;  %1924 = vmatprep.subr.bf16.mxu1 %v2059_v0 }
  0x22   :  { %1905 = vmatpush3.bf16.msk.msra.mxu0 %vm2097_vm3, %v1887_v5  ;;  %1734 = vmatprep.mubr.msk.f32.mxu0 %vm2060_vm0, %v2061_v1 }
  0x23   :  { %1910 = vmatprep.subr.bf16.mxu0 %v2059_v0  ;;  %1756 = vmatmul.mubr.msk.f32.vlgmr.msra.gmra.mrb[4].mxu1 %vm68_vm4, %v1587_v19 }
  0x24   :  { %1926 = vmatpush3.bf16.msra.mxu1 %v2148_v13  ;;  %1777 = vmatprep.mubr.msk.f32.mxu1 %vm2060_vm0, %v2061_v1 }
  0x25   :  { %1735 = vmatmul.mubr.msk.f32.vlgmr.msra.gmra.mrb[6].mxu0 %vm68_vm4, %v1584_v9  ;;  %1927 = vmatprep.subr.bf16.mxu1 %v2059_v0  ;;  %v40_v9 = vld [vmem:[#allocation2 + $0x78] sm:$0xff] }
  0x26   :  { %1913 = vmatpush3.bf16.msk.msra.mxu0 %vm2097_vm3, %v1887_v5  ;;  %1748 = vmatprep.mubr.msk.f32.mxu0 %vm2060_vm0, %v2061_v1  ;;  %v1979_v11 = vpack.c.bf16 %v41_v10, %v40_v9 }
  0x27   :  { %1918 = vmatprep.subr.bf16.mxu0 %v2059_v0 }
  0x28   :  { %1929 = vmatpush3.bf16.msra.mxu1 %v2153_v16 }
  0x29   :  { %1749 = vmatmul.mubr.msk.f32.vlgmr.msra.gmra.mrb[8].mxu0 %vm68_vm4, %v1586_v12  ;;  %1936 = vmatprep.subr.bf16.mxu1 %v2059_v0  ;;  %v42_v12 = vld [vmem:[#allocation2 + $0x88] sm:$0xff] }
  0x2a   :  { %1920 = vmatpush3.bf16.msra.mxu0 %v2148_v13  ;;  %1766 = vmatprep.mubr.msk.f32.mxu0 %vm2060_vm0, %v2061_v1 }
  0x2b   :  { %1921 = vmatprep.subr.bf16.mxu0 %v2059_v0 }
  0x2e   :  { %1923 = vmatpush3.bf16.msra.mxu0 %v2153_v16 }
  0x2f   :  { %1930 = vmatprep.subr.bf16.mxu0 %v2059_v0 }
  0x31   :  { %1767 = vmatmul.mubr.f32.vlgmr.msra.gmra.mrb[0].mxu0 %v2061_v1 }
  0x32   :  { %1932 = vmatpush3.bf16.msra.mxu0 %v2148_v13  ;;  %1788 = vmatprep.mubr.msk.f32.mxu0 %vm2060_vm0, %v2061_v1 }
  0x33   :  { %1933 = vmatprep.subr.bf16.mxu0 %v2059_v0 }
  0x36   :  { %1935 = vmatpush3.bf16.msra.mxu0 %v2153_v16 }
  0x37   :  { %1942 = vmatprep.subr.bf16.mxu0 %v2059_v0 }
  0xf0   :  { %v215_v20 = vpop.f32.mrb[2].mxu0 }
  0xf1   :  { %v1715_v21 = vpop.f32.mrb[3].mxu0  ;;  %v216_v27 = vadd.f32 %v2195_v22, %v215_v20 }
  0xf2   :  { %v2063_v21 = vmov 0  }
  0xf3   :  { %2015 = vset.pattern.permute.xlu0 %v2063_v21 }
 0x104   :  { %v727_v23 = vpop.f32.mrb[0].mxu0 }
 0x105   :  { %v1984_v24 = vadd.f32 %v2195_v22, %v727_v23  ;;  %v1768_v25 = vpop.f32.mrb[1].mxu0 }
 0x107   :  { %2016 = vtanh.f32 %v1984_v24 }
 0x111   :  { %v2017_v26 = vpop.eup %2016 }
 0x112   :  { %1778 = vmatmul.mubr.msk.f32.vlgmr.msra.gmra.mrb[6].mxu1 %vm657_vm5, %v2017_v26  ;;  %v47_v26 = vld [vmem:[#allocation2 + $0x9b] sm:$0x1] }
 0x113   :  { %1938 = vmatpush3.bf16.msra.mxu1 %v2148_v13  ;;  %1799 = vmatprep.mubr.msk.f32.mxu1 %vm2060_vm0, %v2061_v1 }
 0x114   :  { %1939 = vmatprep.subr.bf16.mxu1 %v2059_v0 }
 0x117   :  { %1941 = vmatpush3.bf16.msra.mxu1 %v2153_v16 }
 0x118   :  { %1948 = vmatprep.subr.bf16.mxu1 %v2059_v0 }
 0x1e5   :  { %v802_v28 = vpop.f32.mrb[6].mxu1 }
 0x1e6   :  { %v806_v29 = vadd.f32 %v802_v28, %v216_v27  ;;  %v1779_v30 = vpop.f32.mrb[7].mxu1 }
 0x1e8   :  { %2018 = vtanh.f32 %v806_v29 }
 0x1f2   :  { %v2019_v31 = vpop.eup %2018 }
 0x1f3   :  { %1789 = vmatmul.mubr.msk.f32.vlgmr.msra.gmra.mrb[4].mxu0 %vm657_vm5, %v2019_v31 }
 0x1f4   :  { %1944 = vmatpush3.bf16.msra.mxu0 %v2148_v13  ;;  %1810 = vmatprep.mubr.msk.f32.mxu0 %vm2060_vm0, %v2061_v1 }
 0x1f5   :  { %1945 = vmatprep.subr.bf16.mxu0 %v2059_v0 }
 0x1f8   :  { %1947 = vmatpush3.bf16.msra.mxu0 %v2153_v16 }
 0x1f9   :  { %1954 = vmatprep.subr.bf16.mxu0 %v2059_v0 }
 0x2c6   :  { %v877_v32 = vpop.f32.mrb[4].mxu0 }
 0x2c7   :  { %v1987_v33 = vadd.f32 %v2195_v22, %v877_v32  ;;  %v1790_v34 = vpop.f32.mrb[5].mxu0 }
 0x2c9   :  { %2020 = vtanh.f32 %v1987_v33 }
 0x2d3   :  { %v2021_v35 = vpop.eup %2020 }
 0x2d4   :  { %1800 = vmatmul.mubr.msk.f32.vlgmr.msra.gmra.mrb[0].mxu1 %vm657_vm5, %v2021_v35 }
 0x2d5   :  { %1950 = vmatpush3.bf16.msra.mxu1 %v2148_v13  ;;  %1821 = vmatprep.mubr.msk.f32.mxu1 %vm2060_vm0, %v2061_v1 }
 0x2d6   :  { %1951 = vmatprep.subr.bf16.mxu1 %v2059_v0 }
 0x2d9   :  { %1953 = vmatpush3.bf16.msra.mxu1 %v2153_v16 }
 0x2da   :  { %1960 = vmatprep.subr.bf16.mxu1 %v2059_v0 }
 0x3a7   :  { %v952_v36 = vpop.f32.mrb[0].mxu1 }
 0x3a8   :  { %v1988_v37 = vadd.f32 %v2195_v22, %v952_v36  ;;  %v1801_v38 = vpop.f32.mrb[1].mxu1 }
 0x3aa   :  { %2022 = vtanh.f32 %v1988_v37 }
 0x3b4   :  { %v2023_v39 = vpop.eup %2022 }
 0x3b5   :  { %1811 = vmatmul.mubr.msk.f32.vlgmr.msra.gmra.mrb[6].mxu0 %vm657_vm5, %v2023_v39 }
 0x3b6   :  { %1956 = vmatpush3.bf16.msra.mxu0 %v2148_v13  ;;  %1832 = vmatprep.mubr.msk.f32.mxu0 %vm2060_vm0, %v2061_v1 }
 0x3b7   :  { %1957 = vmatprep.subr.bf16.mxu0 %v2059_v0 }
 0x3ba   :  { %1959 = vmatpush3.bf16.msra.mxu0 %v2153_v16 }
 0x3bb   :  { %1966 = vmatprep.subr.bf16.mxu0 %v2059_v0 }
 0x488   :  { %v1027_v40 = vpop.f32.mrb[6].mxu0 }
 0x489   :  { %v1989_v41 = vadd.f32 %v2195_v22, %v1027_v40  ;;  %v1812_v42 = vpop.f32.mrb[7].mxu0 }
 0x48b   :  { %2024 = vtanh.f32 %v1989_v41 }
 0x495   :  { %v2025_v43 = vpop.eup %2024 }
 0x496   :  { %1822 = vmatmul.mubr.msk.f32.vlgmr.msra.gmra.mrb[2].mxu1 %vm657_vm5, %v2025_v43 }
 0x497   :  { %1962 = vmatpush3.bf16.msra.mxu1 %v2148_v13  ;;  %1843 = vmatprep.mubr.msk.f32.mxu1 %vm2060_vm0, %v2061_v1  ;;  %v43_v13 = vld [vmem:[#allocation2 + $0x90] sm:$0xff] }
 0x498   :  { %1963 = vmatprep.subr.bf16.mxu1 %v2059_v0  ;;  %v1982_v14 = vpack.c.bf16 %v43_v13, %v42_v12 }
 0x49b   :  { %1965 = vmatpush3.bf16.msra.mxu1 %v2153_v16 }
 0x49c   :  { %1857 = vmatprep.subr.mxu1 %v2061_v1 }
 0x569   :  { %v1102_v44 = vpop.f32.mrb[2].mxu1 }
 0x56a   :  { %v1990_v45 = vadd.f32 %v2195_v22, %v1102_v44  ;;  %v1823_v46 = vpop.f32.mrb[3].mxu1 }
 0x56c   :  { %2026 = vtanh.f32 %v1990_v45 }
 0x576   :  { %v2027_v47 = vpop.eup %2026 }
 0x577   :  { %1833 = vmatmul.mubr.msk.f32.vlgmr.msra.gmra.mrb[8].mxu0 %vm657_vm5, %v2027_v47 }
 0x578   :  { %1854 = vmatprep.mubr.msk.f32.mxu0 %vm2060_vm0, %v2061_v1  ;;  %1968 = vmatpush3.bf16.msra.mxu0 %v1967_v55 }
 0x579   :  { %1969 = vmatprep.subr.bf16.mxu0 %v2059_v0 }
 0x57c   :  { %1971 = vmatpush3.bf16.msra.mxu0 %v1970_v58 }
 0x57d   :  { %1881 = vmatprep.subr.mxu0 %v2061_v1 }
 0x64a   :  { %v1177_v48 = vpop.f32.mrb[8].mxu0 }
 0x64b   :  { %v1991_v49 = vadd.f32 %v2195_v22, %v1177_v48  ;;  %v1834_v50 = vpop.f32.mrb[9].mxu0 }
 0x64d   :  { %2028 = vtanh.f32 %v1991_v49 }
 0x657   :  { %v2029_v51 = vpop.eup %2028 }
 0x658   :  { %1844 = vmatmul.mubr.msk.f32.vlgmr.msra.gmra.mrb[4].mxu1 %vm657_vm5, %v2029_v51 }
 0x659   :  { %1859 = vmatprep.mubr.msk.f32.mxu1 %vm2060_vm0, %v2061_v1  ;;  %1858 = vmatpush3.msk.msra.mxu1 %vm1334_vm6, %v31_v57 }
 0x65a   :  { %1972 = vmatprep.subr.bf16.mxu1 %v2059_v0 }
 0x65c   :  { %1860 = vmatmul.mubr.msk.f32.vlgmr.msra.gmra.mrb[8].mxu1 %vm1331_vm7, %v2106_v6 }
 0x65d   :  { %1878 = vmatprep.mubr.msk.f32.mxu1 %vm2060_vm0, %v2061_v1  ;;  %1974 = vmatpush3.bf16.msra.mxu1 %v1973_v62 }
 0x65e   :  { %1975 = vmatprep.subr.bf16.mxu1 %v2059_v0 }
 0x661   :  { %1977 = vmatpush3.bf16.msra.mxu1 %v1976_v2 }
 0x662   :  { %1978 = vmatprep.subr.bf16.mxu1 %v2059_v0 }
 0x665   :  { %1980 = vmatpush3.bf16.msra.mxu1 %v1979_v11 }
 0x666   :  { %1981 = vmatprep.subr.bf16.mxu1 %v2059_v0 }
 0x669   :  { %1983 = vmatpush3.bf16.msra.mxu1 %v1982_v14 }
 0x72b   :  { %v1252_v3 = vpop.f32.mrb[4].mxu1 }
 0x72c   :  { %v1992_v4 = vadd.f32 %v2195_v22, %v1252_v3  ;;  %v1845_v5 = vpop.f32.mrb[5].mxu1  ;;  %v1616_v22 = vld [vmem:[#allocation2 + $0x9a] ss:$0 sm:$0xff] }
 0x72e   :  { %2030 = vtanh.f32 %v1992_v4 }
 0x72f   :  { %v1404_v7 = vpop.f32.mrb[8].mxu1 }
 0x730   :  { %v1861_v8 = vpop.f32.mrb[9].mxu1 }
 0x738   :  { %v2031_v6 = vpop.eup %2030 }
 0x739   :  { %1855 = vmatmul.mubr.msk.f32.vlgmr.msra.gmra.mrb[10].mxu0 %vm657_vm5, %v2031_v6 }
 0x73a   :  { %1883 = vmatprep.mubr.msk.f32.mxu0 %vm2060_vm0, %v2061_v1  ;;  %v48_v1 = vld [vmem:[#allocation2 + $0x9c] sm:$0x1] }
 0x73b   :  { %1495 = vperm.xlu0 %2015, %v48_v1  }
 0x7ba   :  { %v1496_v27 = vpop.permute.xlu0 %1495 }
 0x80c   :  { %v1327_v16 = vpop.f32.mrb[10].mxu0 }
 0x80d   :  { %v1405_v17 = vadd.f32 %v1404_v7, %v1327_v16  ;;  %v1856_v18 = vpop.f32.mrb[11].mxu0 }
 0x80f   :  { %v1412_v19 = vadd.f32 %v1615_v15, %v1405_v17 }
 0x811   :  { %v1413_v20 = vmax.f32 %v1412_v19, 0.0 }
 0x813   :  { %1879 = vmatmul.mubr.msk.f32.vlgmr.msra.gmra.mrb[10].mxu1 %vm1418_vm8, %v1413_v20 }
 0x8e6   :  { %v1488_v23 = vpop.f32.mrb[10].mxu1 }
 0x8e7   :  { %v1489_v24 = vadd.f32 %v1616_v22, %v1488_v23  ;;  %v1880_v0 = vpop.f32.mrb[11].mxu1 }
 0x8e9   :  { %v1492_v25 = vmax.f32 %v1489_v24, 0.0 }
 0x8eb   :  { %1882 = vmatpush3.xpose.msk.msra.mxu0 %vm657_vm5, %v1492_v25 }
 0x8ee   :  { %1884 = vmatmul.mubr.msk.f32.vlgmr.msra.gmra.mrb[12].mxu0 %vm657_vm5, %v47_v26 }
 0x9c1   :  { %v1570_v28 = vpop.f32.mrb[12].mxu0 }
 0x9c2   :  { %v1571_v29 = vadd.f32 %v1570_v28, %v1496_v27  ;;  %v1885_v30 = vpop.f32.mrb[13].mxu0 }
 0x9c4   :  { %1575 = vst.msk [vmem:[%s2265_s2] sm:$0x1] %vm1574_vm9, %v1571_v29 }
 0x9c5   :  { %1580 = vsyncpa [#allocation3], 1 }

</bundles_post_ra>
